<compile_context>
chip_gen: v6e
topology: v6e:2x2x1
jax: 0.10.0
libtpu: 0.0.40
codegen_flags: <defaults>
</compile_context>

<pallas_src>
import jax
import jax.numpy as jnp
from jax.experimental import pallas as pl
from jax.experimental.pallas import tpu as pltpu

INPUT_DIM = 4          # data.shape[1] + 1 == 3 + 1 (Hindmarsh-Rose state is 3-d)
FEAT = INPUT_DIM - 1   # 3
LANE = 128             # TPU lane width
MAX_TILE_B = 512       # lane-dense batch tile (~85% of HBM roofline measured at 512)


def _pick_tile(b_pad):
    """Largest tile <= MAX_TILE_B that divides b_pad (b_pad % 128 == 0)."""
    tile = min(MAX_TILE_B, b_pad)
    while b_pad % tile:
        tile //= 2
    return tile


def _fc_kernel(t_ref, w_ref, b_ref, yt_ref, out_ref):
    # t_ref  : (1, 1)         SMEM   scalar ODE time t
    # w_ref  : (4, 4)         SMEM   nn.Linear weight (out_features, in_features)
    # b_ref  : (1, 4)         SMEM   nn.Linear bias
    # yt_ref : (FEAT, tile)   VMEM   lane-major state block (batch on lanes)
    # out_ref: (FEAT, tile)   VMEM   lane-dense output block
    t = t_ref[0, 0]
    y = yt_ref[...]                                              # (FEAT, tile)
    row = jax.lax.broadcasted_iota(jnp.int32, out_ref.shape, 0)  # sublane index

    def splat_rows(vals):
        # vals: FEAT scalars -> (FEAT, tile) array with vals[j] on sublane j.
        r = jnp.where(row == 0, vals[0], vals[1])
        for j in range(2, FEAT):
            r = jnp.where(row == j, vals[j], r)
        return r

    # Folded concat-with-t: affine part  t * W[j, 0] + b[j]   (SMEM scalar math).
    acc = splat_rows([t * w_ref[j, 0] + b_ref[0, j] for j in range(FEAT)])
    # Vector part: sum_k W[j, k+1] * y[k, :]  (VPU FMAs on full (FEAT, tile) vregs).
    for k in range(FEAT):
        wk = splat_rows([w_ref[j, k + 1] for j in range(FEAT)])
        acc = acc + wk * y[k:k + 1, :]            # (1, tile) sublane-broadcast
    out_ref[...] = acc                            # single unmasked full-block store


def simple_fc_layer_forward_lane_major(t, y_t, W, b):
    """RHS evaluation in lane-major layout.

    y_t: (FEAT, B_pad) f32 with B_pad % 128 == 0; returns (FEAT, B_pad).
    No transposes -- use this form (and keep the state lane-major) inside
    ODE-solver loops.
    """
    feat, b_pad = y_t.shape
    assert feat == FEAT and b_pad % LANE == 0
    tile = _pick_tile(b_pad)

    t_arr = jnp.asarray(t, jnp.float32).reshape(1, 1)
    w_arr = jnp.asarray(W, jnp.float32).reshape(INPUT_DIM, INPUT_DIM)
    b_arr = jnp.asarray(b, jnp.float32).reshape(1, INPUT_DIM)

    return pl.pallas_call(
        _fc_kernel,
        out_shape=jax.ShapeDtypeStruct((FEAT, b_pad), jnp.float32),
        grid=(b_pad // tile,),
        in_specs=[
            pl.BlockSpec(memory_space=pltpu.MemorySpace.SMEM),   # t
            pl.BlockSpec(memory_space=pltpu.MemorySpace.SMEM),   # W
            pl.BlockSpec(memory_space=pltpu.MemorySpace.SMEM),   # b
            pl.BlockSpec((FEAT, tile), lambda i: (0, i)),        # y (lane-major)
        ],
        out_specs=pl.BlockSpec((FEAT, tile), lambda i: (0, i)),
        compiler_params=pltpu.CompilerParams(
            dimension_semantics=("parallel",)),                  # v7x: shard over 2 TCs
    )(t_arr, w_arr, b_arr, jnp.asarray(y_t, jnp.float32))


@jax.jit
def simple_fc_layer_forward(t, y, W, b):
    """PyTorch-compatible interface: t scalar, y (B, 3) -> (B, 3).

    Pads the batch to a lane-dense multiple of 128 and converts layout once
    each way.  For repeated RHS evaluations keep the state lane-major and call
    simple_fc_layer_forward_lane_major instead (no transposes).
    """
    B = y.shape[0]
    b_pad = ((B + LANE - 1) // LANE) * LANE
    y_t = jnp.pad(jnp.asarray(y, jnp.float32).T, ((0, 0), (0, b_pad - B)))
    out_t = simple_fc_layer_forward_lane_major(t, y_t, W, b)
    return out_t[:, :B].T


def _reference_forward(t, y, W, b):
    t_vec = jnp.ones((y.shape[0], 1), jnp.float32) * t
    t_and_y = jnp.concatenate([t_vec, y], axis=1)
    return (t_and_y @ W.T + b)[:, :FEAT]


if __name__ == "__main__":
    key = jax.random.PRNGKey(0)
    k_w, k_b, k_y1, k_y2 = jax.random.split(key, 4)

    # Deterministic nn.Linear(4, 4)-style init: U(-1/sqrt(in), 1/sqrt(in)).
    bound = 1.0 / jnp.sqrt(jnp.float32(INPUT_DIM))
    W = jax.random.uniform(k_w, (INPUT_DIM, INPUT_DIM), jnp.float32, -bound, bound)
    b = jax.random.uniform(k_b, (INPUT_DIM,), jnp.float32, -bound, bound)
    t = jnp.float32(0.37)

    # (1) PyTorch-shaped interface, tiny batch (module's default usage).
    B1 = 2
    y1 = jax.random.normal(k_y1, (B1, FEAT), jnp.float32)
    out1 = jax.block_until_ready(simple_fc_layer_forward(t, y1, W, b))
    ref1 = _reference_forward(t, y1, W, b)
    assert out1.shape == (B1, FEAT)
    assert jnp.allclose(out1, ref1, atol=1e-5, rtol=1e-5), (out1, ref1)

    # (2) Larger, non-multiple-of-128 batch: exercises padding, a multi-tile
    #     grid, and the lane-major (no-transpose) entry point.
    B2 = 600
    y2 = jax.random.normal(k_y2, (B2, FEAT), jnp.float32)
    out2 = jax.block_until_ready(simple_fc_layer_forward(t, y2, W, b))
    ref2 = _reference_forward(t, y2, W, b)
    assert jnp.allclose(out2, ref2, atol=1e-5, rtol=1e-5)

    b_pad = ((B2 + LANE - 1) // LANE) * LANE
    y2_t = jnp.pad(y2.T, ((0, 0), (0, b_pad - B2)))
    out2_lm = jax.block_until_ready(
        jax.jit(simple_fc_layer_forward_lane_major)(t, y2_t, W, b))
    assert jnp.allclose(out2_lm[:, :B2], ref2.T, atol=1e-5, rtol=1e-5)

    print("KERNEL_OK")
</pallas_src>

<mosaic_0001>
module attributes {stable_mosaic.version = 11 : i64} {
  func.func @_fc_kernel(%arg0: i32, %arg1: memref<1x1xf32, #tpu.memory_space<smem>>, %arg2: memref<4x4xf32, #tpu.memory_space<smem>>, %arg3: memref<1x4xf32, #tpu.memory_space<smem>>, %arg4: memref<3x128xf32, #tpu.memory_space<vmem>>, %arg5: memref<3x128xf32, #tpu.memory_space<vmem>>) attributes {dimension_semantics = [#tpu.dimension_semantics<parallel>], iteration_bounds = array<i64: 1>, scalar_prefetch = 0 : i64, scratch_operands = 0 : i64, tpu.core_type = #tpu.core_type<tc>, window_params = [{transform_indices = @transform_0, window_bounds = array<i64: 1, 1>}, {transform_indices = @transform_1, window_bounds = array<i64: 4, 4>}, {transform_indices = @transform_2, window_bounds = array<i64: 1, 4>}, {transform_indices = @transform_3, window_bounds = array<i64: 3, 128>}, {transform_indices = @transform_4, window_bounds = array<i64: 3, 128>}]} {
    %c0 = arith.constant 0 : index
    %c0_0 = arith.constant 0 : index
    %0 = memref.load %arg1[%c0, %c0_0] : memref<1x1xf32, #tpu.memory_space<smem>>
    %c0_1 = arith.constant 0 : index
    %c0_2 = arith.constant 0 : index
    %1 = vector.load %arg4[%c0_1, %c0_2] : memref<3x128xf32, #tpu.memory_space<vmem>>, vector<3x128xf32>
    %2 = tpu.iota {dimensions = array<i32: 0>} : vector<3x128xi32>
    %c0_3 = arith.constant 0 : index
    %c0_4 = arith.constant 0 : index
    %3 = memref.load %arg2[%c0_3, %c0_4] : memref<4x4xf32, #tpu.memory_space<smem>>
    %4 = arith.mulf %0, %3 : f32
    %c0_5 = arith.constant 0 : index
    %c0_6 = arith.constant 0 : index
    %5 = memref.load %arg3[%c0_5, %c0_6] : memref<1x4xf32, #tpu.memory_space<smem>>
    %6 = arith.addf %4, %5 : f32
    %c1 = arith.constant 1 : index
    %c0_7 = arith.constant 0 : index
    %7 = memref.load %arg2[%c1, %c0_7] : memref<4x4xf32, #tpu.memory_space<smem>>
    %8 = arith.mulf %0, %7 : f32
    %c0_8 = arith.constant 0 : index
    %c1_9 = arith.constant 1 : index
    %9 = memref.load %arg3[%c0_8, %c1_9] : memref<1x4xf32, #tpu.memory_space<smem>>
    %10 = arith.addf %8, %9 : f32
    %c2 = arith.constant 2 : index
    %c0_10 = arith.constant 0 : index
    %11 = memref.load %arg2[%c2, %c0_10] : memref<4x4xf32, #tpu.memory_space<smem>>
    %12 = arith.mulf %0, %11 : f32
    %c0_11 = arith.constant 0 : index
    %c2_12 = arith.constant 2 : index
    %13 = memref.load %arg3[%c0_11, %c2_12] : memref<1x4xf32, #tpu.memory_space<smem>>
    %14 = arith.addf %12, %13 : f32
    %c0_i32 = arith.constant 0 : i32
    %15 = vector.broadcast %c0_i32 : i32 to vector<3x128xi32>
    %16 = arith.cmpi eq, %2, %15 : vector<3x128xi32>
    %17 = vector.broadcast %6 : f32 to vector<3x128xf32>
    %18 = vector.broadcast %10 : f32 to vector<3x128xf32>
    %19 = arith.select %16, %17, %18 : vector<3x128xi1>, vector<3x128xf32>
    %c2_i32 = arith.constant 2 : i32
    %20 = vector.broadcast %c2_i32 : i32 to vector<3x128xi32>
    %21 = arith.cmpi eq, %2, %20 : vector<3x128xi32>
    %22 = vector.broadcast %14 : f32 to vector<3x128xf32>
    %23 = arith.select %21, %22, %19 : vector<3x128xi1>, vector<3x128xf32>
    %c0_13 = arith.constant 0 : index
    %c1_14 = arith.constant 1 : index
    %24 = memref.load %arg2[%c0_13, %c1_14] : memref<4x4xf32, #tpu.memory_space<smem>>
    %c1_15 = arith.constant 1 : index
    %c1_16 = arith.constant 1 : index
    %25 = memref.load %arg2[%c1_15, %c1_16] : memref<4x4xf32, #tpu.memory_space<smem>>
    %c2_17 = arith.constant 2 : index
    %c1_18 = arith.constant 1 : index
    %26 = memref.load %arg2[%c2_17, %c1_18] : memref<4x4xf32, #tpu.memory_space<smem>>
    %c0_i32_19 = arith.constant 0 : i32
    %27 = vector.broadcast %c0_i32_19 : i32 to vector<3x128xi32>
    %28 = arith.cmpi eq, %2, %27 : vector<3x128xi32>
    %29 = vector.broadcast %24 : f32 to vector<3x128xf32>
    %30 = vector.broadcast %25 : f32 to vector<3x128xf32>
    %31 = arith.select %28, %29, %30 : vector<3x128xi1>, vector<3x128xf32>
    %c2_i32_20 = arith.constant 2 : i32
    %32 = vector.broadcast %c2_i32_20 : i32 to vector<3x128xi32>
    %33 = arith.cmpi eq, %2, %32 : vector<3x128xi32>
    %34 = vector.broadcast %26 : f32 to vector<3x128xf32>
    %35 = arith.select %33, %34, %31 : vector<3x128xi1>, vector<3x128xf32>
    %36 = vector.extract_strided_slice %1 {offsets = [0, 0], sizes = [1, 128], strides = [1, 1]} : vector<3x128xf32> to vector<1x128xf32>
    %37 = vector.broadcast %36 : vector<1x128xf32> to vector<3x128xf32>
    %38 = arith.mulf %35, %37 : vector<3x128xf32>
    %39 = arith.addf %23, %38 : vector<3x128xf32>
    %c0_21 = arith.constant 0 : index
    %c2_22 = arith.constant 2 : index
    %40 = memref.load %arg2[%c0_21, %c2_22] : memref<4x4xf32, #tpu.memory_space<smem>>
    %c1_23 = arith.constant 1 : index
    %c2_24 = arith.constant 2 : index
    %41 = memref.load %arg2[%c1_23, %c2_24] : memref<4x4xf32, #tpu.memory_space<smem>>
    %c2_25 = arith.constant 2 : index
    %c2_26 = arith.constant 2 : index
    %42 = memref.load %arg2[%c2_25, %c2_26] : memref<4x4xf32, #tpu.memory_space<smem>>
    %c0_i32_27 = arith.constant 0 : i32
    %43 = vector.broadcast %c0_i32_27 : i32 to vector<3x128xi32>
    %44 = arith.cmpi eq, %2, %43 : vector<3x128xi32>
    %45 = vector.broadcast %40 : f32 to vector<3x128xf32>
    %46 = vector.broadcast %41 : f32 to vector<3x128xf32>
    %47 = arith.select %44, %45, %46 : vector<3x128xi1>, vector<3x128xf32>
    %c2_i32_28 = arith.constant 2 : i32
    %48 = vector.broadcast %c2_i32_28 : i32 to vector<3x128xi32>
    %49 = arith.cmpi eq, %2, %48 : vector<3x128xi32>
    %50 = vector.broadcast %42 : f32 to vector<3x128xf32>
    %51 = arith.select %49, %50, %47 : vector<3x128xi1>, vector<3x128xf32>
    %52 = vector.extract_strided_slice %1 {offsets = [1, 0], sizes = [1, 128], strides = [1, 1]} : vector<3x128xf32> to vector<1x128xf32>
    %53 = vector.broadcast %52 : vector<1x128xf32> to vector<3x128xf32>
    %54 = arith.mulf %51, %53 : vector<3x128xf32>
    %55 = arith.addf %39, %54 : vector<3x128xf32>
    %c0_29 = arith.constant 0 : index
    %c3 = arith.constant 3 : index
    %56 = memref.load %arg2[%c0_29, %c3] : memref<4x4xf32, #tpu.memory_space<smem>>
    %c1_30 = arith.constant 1 : index
    %c3_31 = arith.constant 3 : index
    %57 = memref.load %arg2[%c1_30, %c3_31] : memref<4x4xf32, #tpu.memory_space<smem>>
    %c2_32 = arith.constant 2 : index
    %c3_33 = arith.constant 3 : index
    %58 = memref.load %arg2[%c2_32, %c3_33] : memref<4x4xf32, #tpu.memory_space<smem>>
    %c0_i32_34 = arith.constant 0 : i32
    %59 = vector.broadcast %c0_i32_34 : i32 to vector<3x128xi32>
    %60 = arith.cmpi eq, %2, %59 : vector<3x128xi32>
    %61 = vector.broadcast %56 : f32 to vector<3x128xf32>
    %62 = vector.broadcast %57 : f32 to vector<3x128xf32>
    %63 = arith.select %60, %61, %62 : vector<3x128xi1>, vector<3x128xf32>
    %c2_i32_35 = arith.constant 2 : i32
    %64 = vector.broadcast %c2_i32_35 : i32 to vector<3x128xi32>
    %65 = arith.cmpi eq, %2, %64 : vector<3x128xi32>
    %66 = vector.broadcast %58 : f32 to vector<3x128xf32>
    %67 = arith.select %65, %66, %63 : vector<3x128xi1>, vector<3x128xf32>
    %68 = vector.extract_strided_slice %1 {offsets = [2, 0], sizes = [1, 128], strides = [1, 1]} : vector<3x128xf32> to vector<1x128xf32>
    %69 = vector.broadcast %68 : vector<1x128xf32> to vector<3x128xf32>
    %70 = arith.mulf %67, %69 : vector<3x128xf32>
    %71 = arith.addf %55, %70 : vector<3x128xf32>
    %c0_36 = arith.constant 0 : index
    %c0_37 = arith.constant 0 : index
    %72 = vector.load %arg5[%c0_36, %c0_37] : memref<3x128xf32, #tpu.memory_space<vmem>>, vector<3x128xf32>
    tpu.vector_store %arg5[%c0_36, %c0_37], %71 {strides = array<i32>} : memref<3x128xf32, #tpu.memory_space<vmem>>, vector<3x128xf32>,
    return
  }
  func.func @transform_0(%arg0: i32) -> (i32, i32) {
    %c0_i32 = arith.constant 0 : i32
    %c0_i32_0 = arith.constant 0 : i32
    %c0_i32_1 = arith.constant 0 : i32
    return %c0_i32, %c0_i32_0 : i32, i32
  }
  func.func @transform_1(%arg0: i32) -> (i32, i32) {
    %c0_i32 = arith.constant 0 : i32
    %c0_i32_0 = arith.constant 0 : i32
    %c0_i32_1 = arith.constant 0 : i32
    return %c0_i32, %c0_i32_0 : i32, i32
  }
  func.func @transform_2(%arg0: i32) -> (i32, i32) {
    %c0_i32 = arith.constant 0 : i32
    %c0_i32_0 = arith.constant 0 : i32
    %c0_i32_1 = arith.constant 0 : i32
    return %c0_i32, %c0_i32_0 : i32, i32
  }
  func.func @transform_3(%arg0: i32) -> (i32, i32) {
    %c0_i32 = arith.constant 0 : i32
    %c0_i32_0 = arith.constant 0 : i32
    return %c0_i32, %arg0 : i32, i32
  }
  func.func @transform_4(%arg0: i32) -> (i32, i32) {
    %c0_i32 = arith.constant 0 : i32
    %c0_i32_0 = arith.constant 0 : i32
    return %c0_i32, %arg0 : i32, i32
  }
}

</mosaic_0001>

<bundles_post_ra>
// kernel: simple_fc_layer_forward.1
= control target key start
LH: loop header
LB: loop body
LE: loop exit
PB: predicated region body
PF: predicated region fallthrough
CT: control target
= control target key end

     0   :  { %10 = vsyncpa [#allocation4], 0  ;;  %s214_s0 = inlined_call_operand.<no memory space> [shape: f32[1,1], index: 0, kind: input, shape index: {}]   ;;  %s215_s1 = inlined_call_operand.vmem [shape: f32[4,4], index: 1, kind: input, shape index: {}]   ;;  %s216_s2 = inlined_call_operand.vmem [shape: f32[1,4], index: 2, kind: input, shape index: {}]   ;;  %s217_s3 = inlined_call_operand.vmem [shape: f32[3,128], index: 3, kind: input, shape index: {}]   ;;  %s218_s4 = inlined_call_operand.vmem [shape: f32[3,128], index: 4, kind: output, shape index: {}]  }
   0x1   :  { %s20_s17 = sshll.u32 %s215_s1, 4  ;;  %s21_s17 = int_to_ptr.vmem [resolvable:$true] %s20_s17 }
   0x2   :  { %11 = vsyncpa [#allocation6], 0  ;;  %s30_s20 = sshll.u32 %s216_s2, 4  ;;  %s130_s21 = scalar_lea.vmem %s21_s17, 64  ;;  %s31_s20 = int_to_ptr.vmem [resolvable:$true] %s30_s20 }
   0x3   :  { %p131_p0 = scmp.ne.s32.totalorder %s21_s17, %s130_s21  ;;  %p135_p1 = scmp.lt.s32.totalorder %s21_s17, %s21_s17 }
   0x4   :  { %p136_p2 = scmp.lt.s32.totalorder %s130_s21, %s130_s21 }
   0x6   :  { %p137_p3 = por %p136_p2, %p135_p1 }
   0x8   :  { %p138_p4 = pnand %p137_p3, %p131_p0 }
   0xa   :  { %141 = shalt.err (!%p138_p4)
}
   0xb   :  { %s158_s22 = smov [#allocation3]   ;;  %s142_s23 = scalar_lea.vmem %s31_s20, 16 }
   0xc   :  { %23 = dma.vmem_to_smem %s21_s17, 64, %s158_s22, [#allocation4]  }
   0xd   :  { %p143_p5 = scmp.ne.s32.totalorder %s31_s20, %s142_s23  ;;  %p147_p6 = scmp.lt.s32.totalorder %s31_s20, %s31_s20 }
   0xe   :  { %p148_p7 = scmp.lt.s32.totalorder %s142_s23, %s142_s23 }
  0x10   :  { %p149_p8 = por %p148_p7, %p147_p6 }
  0x12   :  { %p150_p9 = pnand %p149_p8, %p143_p5 }
  0x14   :  { %153 = shalt.err (!%p150_p9)
}
  0x15   :  { %s159_s1 = smov [#allocation5]  }
  0x16   :  { %33 = dma.vmem_to_smem %s31_s20, 16, %s159_s1, [#allocation6]  }
  0x17   :  { %154 = dma.done.wait [#allocation4], 64  }
  0x18   :  { %155 = vsyncadd [#allocation4], 4294967232 }
  0x19   :  { %156 = dma.done.wait [#allocation6], 16  }
  0x1a   :  { %157 = vsyncadd [#allocation6], 4294967280 }
  0x1b   :  { %42 = sfence }
  0x1c   :  { %s47_s2 = sld [smem:[#allocation3]]  ;;  %v45_v0 = vlaneseq  ;;  %v44_v3 = vld [vmem:[%s217_s3] sm:$0x7] }
  0x1d   :  { %s49_s24 = sld [smem:[#allocation5]] }
  0x1e   :  { %s115_s25 = sld [smem:[#allocation3 + $0x80]]  ;;  %v46_v1 = vshrl.u32 %v45_v0, 7 }
  0x1f   :  { %s116_s26 = sld [smem:[#allocation5 + $0x1]] }
  0x20   :  { %s117_s27 = sld [smem:[#allocation3 + $0x100]]  ;;  %v76_v2 = vsub.s32 0, %v46_v1  ;;  %vm59_vm0 = vcmp.eq.s32.totalorder %v46_v1, 0  ;;  %vm63_vm1 = vcmp.eq.s32.totalorder %v46_v1, 2  ;;  %v90_v12 = vsub.s32 1, %v46_v1 }
  0x21   :  { %s118_s28 = sld [smem:[#allocation5 + $0x2]]  ;;  %v104_v18 = vsub.s32 2, %v46_v1 }
  0x22   :  { %s48_s5 = smul.f32 %s47_s2, %s214_s0  ;;  %s119_s6 = sld [smem:[#allocation3 + $0x1]]  ;;  %v77_v8 = vrot.slane %v44_v3, %v76_v2  ;;  %v91_v19 = vrot.slane %v44_v3, %v90_v12 }
  0x23   :  { %s120_s7 = sld [smem:[#allocation3 + $0x81]]  ;;  %v105_v26 = vrot.slane %v44_v3, %v104_v18 }
  0x24   :  { %s50_s8 = sadd.f32 %s49_s24, %s48_s5  ;;  %s52_s11 = smul.f32 %s115_s25, %s214_s0 }
  0x25   :  { %s121_s12 = sld [smem:[#allocation3 + $0x101]] }
  0x26   :  { %s54_s15 = sadd.f32 %s116_s26, %s52_s11  ;;  %s56_s18 = smul.f32 %s117_s27, %s214_s0  ;;  %v60_v4 = vstv %s50_s8 }
  0x27   :  { %s122_s19 = sld [smem:[#allocation3 + $0x2]] }
  0x28   :  { %s58_s20 = sadd.f32 %s118_s28, %s56_s18  ;;  %v61_v5 = vstv %s54_s15  ;;  %v69_v6 = vstv %s119_s6 }
  0x29   :  { %v70_v7 = vstv %s120_s7  ;;  %s123_s21 = sld [smem:[#allocation3 + $0x82]]  ;;  %v62_v9 = vsel %vm59_vm0, %v60_v4, %v61_v5 }
  0x2a   :  { %v64_v10 = vstv %s58_s20  ;;  %v71_v11 = vsel %vm59_vm0, %v69_v6, %v70_v7  ;;  %s124_s3 = sld [smem:[#allocation3 + $0x102]] }
  0x2b   :  { %v72_v13 = vstv %s121_s12  ;;  %s125_s22 = sld [smem:[#allocation3 + $0x3]]  ;;  %v65_v15 = vsel %vm63_vm1, %v64_v10, %v62_v9 }
  0x2c   :  { %v73_v14 = vsel %vm63_vm1, %v72_v13, %v71_v11  ;;  %s126_s0 = sld [smem:[#allocation3 + $0x83]] }
  0x2d   :  { %v78_v16 = vmul.f32 %v77_v8, %v73_v14  ;;  %v83_v17 = vstv %s122_s19  ;;  %s127_s23 = sld [smem:[#allocation3 + $0x103]] }
  0x2f   :  { %v84_v20 = vstv %s123_s21  ;;  %v79_v21 = vadd.f32 %v78_v16, %v65_v15 }
  0x30   :  { %v85_v22 = vsel %vm59_vm0, %v83_v17, %v84_v20  ;;  %v86_v23 = vstv %s124_s3 }
  0x31   :  { %v87_v24 = vsel %vm63_vm1, %v86_v23, %v85_v22  ;;  %v97_v25 = vstv %s125_s22 }
  0x32   :  { %v92_v27 = vmul.f32 %v91_v19, %v87_v24  ;;  %v98_v28 = vstv %s126_s0 }
  0x33   :  { %v99_v29 = vsel %vm59_vm0, %v97_v25, %v98_v28  ;;  %v100_v30 = vstv %s127_s23 }
  0x34   :  { %v93_v31 = vadd.f32 %v92_v27, %v79_v21  ;;  %v101_v32 = vsel %vm63_vm1, %v100_v30, %v99_v29 }
  0x35   :  { %v106_v33 = vmul.f32 %v105_v26, %v101_v32 }
  0x37   :  { %v107_v34 = vadd.f32 %v106_v33, %v93_v31 }
  0x39   :  { %108 = vst [vmem:[%s218_s4] sm:$0x7] %v107_v34 }
  0x3a   :  { %113 = vsyncpa [#allocation4], 1 }
  0x3b   :  { %114 = vsyncpa [#allocation6], 1 }

</bundles_post_ra>
